<compile_context>
chip_gen: v6e
topology: v6e:2x2x1
jax: 0.10.0
libtpu: 0.0.40
codegen_flags: <defaults>
</compile_context>

<pallas_src>
import functools

import jax
import jax.numpy as jnp
from jax.experimental import pallas as pl
from jax.experimental.pallas import tpu as pltpu


# -----------------------------------------------------------------------------
# Per-generation configuration (tile size, I/O & activation dtypes, VMEM limit)
# -----------------------------------------------------------------------------
@functools.lru_cache(maxsize=1)
def _tpu_config():
    gen = 0
    try:
        kind = jax.devices()[0].device_kind.lower()
        for g in (7, 6, 5, 4, 3):
            if f"v{g}" in kind:
                gen = g
                break
    except Exception:
        pass

    if gen >= 7:
        # v7x: 64 MiB VMEM/TC -> 256-row tiles + headroom; 2 TCs -> CORE_PARALLEL.
        sem = getattr(pltpu, "CORE_PARALLEL", "parallel")
        return dict(block_rows=256, io_dtype=jnp.bfloat16, act_dtype=jnp.bfloat16,
                    vmem_limit=48 * 1024 * 1024, semantics=(sem,))
    if gen == 6:
        # v6e: 128 MiB VMEM, bf16 VPU/EUP -> big tiles, bf16 I/O + bf16 gate math.
        return dict(block_rows=512, io_dtype=jnp.bfloat16, act_dtype=jnp.bfloat16,
                    vmem_limit=96 * 1024 * 1024, semantics=("parallel",))
    if gen == 5:
        # v5e: 4x128x128 MXU, no bf16 VPU/EUP -> tm=128, f32 gate math.
        return dict(block_rows=128, io_dtype=jnp.float32, act_dtype=jnp.float32,
                    vmem_limit=96 * 1024 * 1024, semantics=("parallel",))
    # Unknown / older generation: conservative defaults.
    return dict(block_rows=256, io_dtype=jnp.float32, act_dtype=jnp.float32,
                vmem_limit=None, semantics=("parallel",))


# -----------------------------------------------------------------------------
# Fused kernel: residual-add + LayerNorm + gated-MLP mixer
# -----------------------------------------------------------------------------
def _make_block_kernel(eps, has_residual, d, e, act_dtype):
    def kernel(*refs):
        if has_residual:
            h_ref, r_ref, wi_ref, bi_ref, wo_ref, y_ref, ho_ref, ro_ref = refs
            res = h_ref[...].astype(jnp.float32) + r_ref[...]
        else:
            # residual = hidden_states (first block): no zero-tensor DMA.
            h_ref, wi_ref, bi_ref, wo_ref, y_ref, ho_ref, ro_ref = refs
            res = h_ref[...].astype(jnp.float32)

        # residual_in_fp32 output (aliased in-place onto the residual input).
        ro_ref[...] = res

        # --- LayerNorm over D: two-pass mean / centered variance --------------
        # ln_w / ln_b are folded offline into wi_ref / bi_ref, so only the
        # centering + inv-std scaling happens here.
        inv_d = 1.0 / d
        mean = jnp.sum(res, axis=-1, keepdims=True) * inv_d
        cen = res - mean
        var = jnp.sum(cen * cen, axis=-1, keepdims=True) * inv_d
        nrm = cen * jax.lax.rsqrt(var + eps)

        # --- gated-MLP mixer: bf16 MXU operands, f32 accumulation -------------
        ug = jnp.dot(nrm.astype(jnp.bfloat16), wi_ref[...],
                     preferred_element_type=jnp.float32) + bi_ref[...]   # (tm, 2E)
        ug = ug.astype(act_dtype)          # bf16 gate math on v6e/v7x, f32 on v5e
        u = ug[:, :e]
        g = ug[:, e:]
        act = (u * jax.nn.sigmoid(u)) * g                                # silu(u)*g

        out = jnp.dot(act.astype(jnp.bfloat16), wo_ref[...],
                      preferred_element_type=jnp.float32)                # (tm, 2D)
        y_ref[...] = out[:, :d].astype(y_ref.dtype)
        ho_ref[...] = out[:, d:].astype(ho_ref.dtype)

    return kernel


# -----------------------------------------------------------------------------
# Pallas wrapper
# -----------------------------------------------------------------------------
def vim_block(hidden, residual, w_in_scaled, b_in, w_out_pack, *, eps=1e-5):
    """hidden: (N, D); residual: (N, D) or None.

    Returns (y (N,D) io_dtype, hidden_out (N,D) io_dtype, residual (N,D) f32).
    """
    cfg = _tpu_config()
    n, d = hidden.shape
    two_e = w_in_scaled.shape[1]
    e = two_e // 2
    assert w_in_scaled.shape == (d, two_e)
    assert w_out_pack.shape == (e, 2 * d)
    assert b_in.shape == (1, two_e)
    if d >= 128:
        # Lane-aligned u/gate and y/hidden splits require 128-multiples at real
        # model sizes (misaligned lane slices force masked partial stores).
        assert d % 128 == 0 and e % 128 == 0, (
            "dim and expand*dim must be multiples of 128 at real model sizes")

    io_dtype = cfg["io_dtype"]
    h2 = hidden.astype(io_dtype)
    has_residual = residual is not None
    r2 = None if residual is None else residual.astype(jnp.float32)

    # Row tile: multiple of 8 (sublane) or the full row extent. No host-side
    # padding -- Pallas masks the ragged last tile, so the fp32 residual alias
    # stays on the original (un-padded) buffer.
    tm = min(cfg["block_rows"], n)
    if tm != n:
        tm = max(8, (tm // 8) * 8)
    grid = (pl.cdiv(n, tm),)

    kernel = _make_block_kernel(eps, has_residual, d, e, cfg["act_dtype"])
    row_spec = pl.BlockSpec((tm, d), lambda i: (i, 0))

    def run(single_buffer_weights):
        def const_spec(shape):
            if single_buffer_weights:
                # Constant index_map -> one resident copy; double buffering
                # would only waste VMEM (matters most on v7x's 64 MiB).
                return pl.BlockSpec(shape, lambda i: (0, 0),
                                    pipeline_mode=pl.Buffered(1))
            return pl.BlockSpec(shape, lambda i: (0, 0))

        in_specs = [row_spec]
        args = [h2]
        if has_residual:
            in_specs.append(row_spec)
            args.append(r2)
        in_specs += [const_spec((d, two_e)), const_spec((1, two_e)),
                     const_spec((e, 2 * d))]
        args += [w_in_scaled.astype(jnp.bfloat16),
                 b_in.astype(jnp.float32),
                 w_out_pack.astype(jnp.bfloat16)]

        # In-place fp32 residual accumulation (no second (N, D) f32 allocation).
        io_alias = {1: 2} if has_residual else {}

        return pl.pallas_call(
            kernel,
            out_shape=(
                jax.ShapeDtypeStruct((n, d), io_dtype),
                jax.ShapeDtypeStruct((n, d), io_dtype),
                jax.ShapeDtypeStruct((n, d), jnp.float32),
            ),
            grid_spec=pltpu.PrefetchScalarGridSpec(
                num_scalar_prefetch=0,
                grid=grid,
                in_specs=in_specs,
                out_specs=(row_spec, row_spec, row_spec),
            ),
            input_output_aliases=io_alias,
            compiler_params=pltpu.CompilerParams(
                dimension_semantics=cfg["semantics"],
                vmem_limit_bytes=cfg["vmem_limit"]),
        )(*args)

    try:
        return run(True)
    except Exception:
        # Fallback for JAX versions without BlockSpec(pipeline_mode=pl.Buffered(1)).
        return run(False)


# -----------------------------------------------------------------------------
# Parameter prep (offline LN-affine fold) and Block forward glue
# -----------------------------------------------------------------------------
def prepare_block_params(ln_w, ln_b, w_in_pack, w_out_pack):
    """Fold LayerNorm affine params into the packed in-projection (offline)."""
    wi = w_in_pack.astype(jnp.float32)
    return {
        "w_in_scaled": (ln_w.astype(jnp.float32)[:, None] * wi).astype(jnp.bfloat16),
        "b_in": (ln_b.astype(jnp.float32) @ wi).reshape(1, -1).astype(jnp.float32),
        "w_out_pack": w_out_pack.astype(jnp.bfloat16),
    }


def init_params(key, dim, expand=2):
    e = dim * expand
    k1, k2, k3, k4, k5, k6 = jax.random.split(key, 6)
    si = 1.0 / jnp.sqrt(dim)
    so = 1.0 / jnp.sqrt(e)
    w_in = jax.random.normal(k1, (dim, e), jnp.float32) * si
    w_gate = jax.random.normal(k2, (dim, e), jnp.float32) * si
    w_y = jax.random.normal(k3, (e, dim), jnp.float32) * so
    w_h = jax.random.normal(k4, (e, dim), jnp.float32) * so
    ln_w = 1.0 + 0.1 * jax.random.normal(k5, (dim,), jnp.float32)
    ln_b = 0.05 * jax.random.normal(k6, (dim,), jnp.float32)

    w_in_raw = jnp.concatenate([w_in, w_gate], axis=1)    # (D, 2E)
    w_out_raw = jnp.concatenate([w_y, w_h], axis=1)       # (E, 2D)

    params = {"ln_w": ln_w, "ln_b": ln_b,
              "w_in_raw": w_in_raw, "w_out_raw": w_out_raw}
    params.update(prepare_block_params(ln_w, ln_b, w_in_raw, w_out_raw))
    return params


def block_forward(params, hidden_states, residual=None, *, eps=1e-5):
    b, l, d = hidden_states.shape
    h2 = hidden_states.reshape(b * l, d)
    r2 = None if residual is None else residual.reshape(b * l, d)
    y, h_out, r_out = vim_block(h2, r2, params["w_in_scaled"], params["b_in"],
                                params["w_out_pack"], eps=eps)
    return (y.reshape(b, l, d),
            h_out.reshape(b, l, d),
            r_out.reshape(b, l, d))            # residual_in_fp32=True


# -----------------------------------------------------------------------------
# Self-test
# -----------------------------------------------------------------------------
if __name__ == "__main__":
    key = jax.random.PRNGKey(0)
    k_param, k_h, k_r = jax.random.split(key, 3)

    B, L, D = 2, 8, 32
    params = init_params(k_param, D, expand=2)

    hidden_states = jax.random.normal(k_h, (B, L, D), jnp.float32)
    residual = jax.random.normal(k_r, (B, L, D), jnp.float32)

    # First-block style call (residual=None) and mid-stack call (residual given).
    y0, h0, r0 = block_forward(params, hidden_states, residual=None)
    y1, h1, r1 = block_forward(params, hidden_states, residual=residual)
    jax.block_until_ready((y0, h0, r0, y1, h1, r1))

    io_dtype = _tpu_config()["io_dtype"]

    # Pure-JAX f32 reference of the same math (unfolded LN params, unpacked-math
    # equivalence; kernel uses bf16 MXU operands, so tolerance is relaxed).
    def ref(h, r):
        hq = h.astype(io_dtype).astype(jnp.float32)
        res = hq if r is None else r.astype(jnp.float32) + hq
        mu = res.mean(-1, keepdims=True)
        var = ((res - mu) ** 2).mean(-1, keepdims=True)
        nrm = (res - mu) * jax.lax.rsqrt(var + 1e-5) * params["ln_w"] + params["ln_b"]
        wi = params["w_in_raw"]
        wo = params["w_out_raw"]
        ug = nrm @ wi
        e = ug.shape[-1] // 2
        u, g = ug[..., :e], ug[..., e:]
        act = (u * jax.nn.sigmoid(u)) * g
        out = act @ wo
        return out[..., :D], out[..., D:], res

    for (yk, hk, rk), (h_in, r_in) in (((y0, h0, r0), (hidden_states, None)),
                                       ((y1, h1, r1), (hidden_states, residual))):
        ry, rh, rr = ref(h_in, r_in)
        assert jnp.allclose(yk.astype(jnp.float32), ry, atol=5e-2, rtol=5e-2), "y mismatch"
        assert jnp.allclose(hk.astype(jnp.float32), rh, atol=5e-2, rtol=5e-2), "hidden mismatch"
        assert jnp.allclose(rk, rr, atol=1e-5), "residual mismatch"

    print("KERNEL_OK")
</pallas_src>

<mosaic_0001>
module attributes {stable_mosaic.version = 11 : i64} {
  func.func @kernel(%arg0: i32, %arg1: memref<16x32xf32, #tpu.memory_space<vmem>>, %arg2: memref<32x128xbf16, #tpu.memory_space<vmem>>, %arg3: memref<1x128xf32, #tpu.memory_space<vmem>>, %arg4: memref<64x64xbf16, #tpu.memory_space<vmem>>, %arg5: memref<16x32xf32, #tpu.memory_space<vmem>>, %arg6: memref<16x32xf32, #tpu.memory_space<vmem>>, %arg7: memref<16x32xf32, #tpu.memory_space<vmem>>) attributes {dimension_semantics = [#tpu.dimension_semantics<parallel>], iteration_bounds = array<i64: 1>, scalar_prefetch = 0 : i64, scratch_operands = 0 : i64, tpu.core_type = #tpu.core_type<tc>, window_params = [{transform_indices = @transform_0, window_bounds = array<i64: 16, 32>}, {pipeline_mode = #tpu.pipeline_mode<synchronous>, transform_indices = @transform_1, window_bounds = array<i64: 32, 128>}, {pipeline_mode = #tpu.pipeline_mode<synchronous>, transform_indices = @transform_2, window_bounds = array<i64: 1, 128>}, {pipeline_mode = #tpu.pipeline_mode<synchronous>, transform_indices = @transform_3, window_bounds = array<i64: 64, 64>}, {transform_indices = @transform_4, window_bounds = array<i64: 16, 32>}, {transform_indices = @transform_5, window_bounds = array<i64: 16, 32>}, {transform_indices = @transform_6, window_bounds = array<i64: 16, 32>}]} {
    %c0 = arith.constant 0 : index
    %c0_0 = arith.constant 0 : index
    %0 = vector.load %arg1[%c0, %c0_0] : memref<16x32xf32, #tpu.memory_space<vmem>>, vector<16x32xf32>
    %c0_1 = arith.constant 0 : index
    %c0_2 = arith.constant 0 : index
    %1 = vector.load %arg7[%c0_1, %c0_2] : memref<16x32xf32, #tpu.memory_space<vmem>>, vector<16x32xf32>
    tpu.vector_store %arg7[%c0_1, %c0_2], %0 {strides = array<i32>} : memref<16x32xf32, #tpu.memory_space<vmem>>, vector<16x32xf32>,
    %cst = arith.constant dense<0.000000e+00> : vector<16xf32>
    %2 = vector.multi_reduction <add>, %0, %cst [1] : vector<16x32xf32> to vector<16xf32>
    %3 = vector.shape_cast %2 : vector<16xf32> to vector<16x1xf32>
    %cst_3 = arith.constant 3.125000e-02 : f32
    %4 = vector.broadcast %cst_3 : f32 to vector<16x1xf32>
    %5 = arith.mulf %3, %4 : vector<16x1xf32>
    %6 = vector.broadcast %5 : vector<16x1xf32> to vector<16x32xf32>
    %7 = arith.subf %0, %6 : vector<16x32xf32>
    %8 = arith.mulf %7, %7 : vector<16x32xf32>
    %cst_4 = arith.constant dense<0.000000e+00> : vector<16xf32>
    %9 = vector.multi_reduction <add>, %8, %cst_4 [1] : vector<16x32xf32> to vector<16xf32>
    %10 = vector.shape_cast %9 : vector<16xf32> to vector<16x1xf32>
    %cst_5 = arith.constant 3.125000e-02 : f32
    %11 = vector.broadcast %cst_5 : f32 to vector<16x1xf32>
    %12 = arith.mulf %10, %11 : vector<16x1xf32>
    %cst_6 = arith.constant 9.99999974E-6 : f32
    %13 = vector.broadcast %cst_6 : f32 to vector<16x1xf32>
    %14 = arith.addf %12, %13 : vector<16x1xf32>
    %15 = math.rsqrt %14 : vector<16x1xf32>
    %16 = vector.broadcast %15 : vector<16x1xf32> to vector<16x32xf32>
    %17 = arith.mulf %7, %16 : vector<16x32xf32>
    %18 = arith.truncf %17 : vector<16x32xf32> to vector<16x32xbf16>
    %c0_7 = arith.constant 0 : index
    %c0_8 = arith.constant 0 : index
    %19 = vector.load %arg2[%c0_7, %c0_8] : memref<32x128xbf16, #tpu.memory_space<vmem>>, vector<32x128xbf16>
    %cst_9 = arith.constant dense<0.000000e+00> : vector<16x128xf32>
    %20 = tpu.matmul %18, %19, %cst_9 {dimension_numbers = #tpu.dot_dimension_numbers<[1], [0], [0], [1], [0, 0, 1, 1], [], []>} : vector<16x32xbf16>, vector<32x128xbf16>, vector<16x128xf32> -> vector<16x128xf32>
    %c0_10 = arith.constant 0 : index
    %c0_11 = arith.constant 0 : index
    %21 = vector.load %arg3[%c0_10, %c0_11] : memref<1x128xf32, #tpu.memory_space<vmem>>, vector<1x128xf32>
    %22 = vector.broadcast %21 : vector<1x128xf32> to vector<16x128xf32>
    %23 = arith.addf %20, %22 : vector<16x128xf32>
    %24 = vector.extract_strided_slice %23 {offsets = [0, 0], sizes = [16, 64], strides = [1, 1]} : vector<16x128xf32> to vector<16x64xf32>
    %25 = vector.extract_strided_slice %23 {offsets = [0, 64], sizes = [16, 64], strides = [1, 1]} : vector<16x128xf32> to vector<16x64xf32>
    %26 = arith.negf %24 : vector<16x64xf32>
    %27 = math.exp %26 : vector<16x64xf32>
    %cst_12 = arith.constant 1.000000e+00 : f32
    %28 = vector.broadcast %cst_12 : f32 to vector<16x64xf32>
    %29 = arith.addf %28, %27 : vector<16x64xf32>
    %30 = arith.divf %28, %29 : vector<16x64xf32>
    %31 = arith.mulf %24, %30 : vector<16x64xf32>
    %32 = arith.mulf %31, %25 : vector<16x64xf32>
    %33 = arith.truncf %32 : vector<16x64xf32> to vector<16x64xbf16>
    %c0_13 = arith.constant 0 : index
    %c0_14 = arith.constant 0 : index
    %34 = vector.load %arg4[%c0_13, %c0_14] : memref<64x64xbf16, #tpu.memory_space<vmem>>, vector<64x64xbf16>
    %cst_15 = arith.constant dense<0.000000e+00> : vector<16x64xf32>
    %35 = tpu.matmul %33, %34, %cst_15 {dimension_numbers = #tpu.dot_dimension_numbers<[1], [0], [0], [1], [0, 0, 1, 1], [], []>} : vector<16x64xbf16>, vector<64x64xbf16>, vector<16x64xf32> -> vector<16x64xf32>
    %36 = vector.extract_strided_slice %35 {offsets = [0, 0], sizes = [16, 32], strides = [1, 1]} : vector<16x64xf32> to vector<16x32xf32>
    %c0_16 = arith.constant 0 : index
    %c0_17 = arith.constant 0 : index
    %37 = vector.load %arg5[%c0_16, %c0_17] : memref<16x32xf32, #tpu.memory_space<vmem>>, vector<16x32xf32>
    tpu.vector_store %arg5[%c0_16, %c0_17], %36 {strides = array<i32>} : memref<16x32xf32, #tpu.memory_space<vmem>>, vector<16x32xf32>,
    %38 = vector.extract_strided_slice %35 {offsets = [0, 32], sizes = [16, 32], strides = [1, 1]} : vector<16x64xf32> to vector<16x32xf32>
    %c0_18 = arith.constant 0 : index
    %c0_19 = arith.constant 0 : index
    %39 = vector.load %arg6[%c0_18, %c0_19] : memref<16x32xf32, #tpu.memory_space<vmem>>, vector<16x32xf32>
    tpu.vector_store %arg6[%c0_18, %c0_19], %38 {strides = array<i32>} : memref<16x32xf32, #tpu.memory_space<vmem>>, vector<16x32xf32>,
    return
  }
  func.func @transform_0(%arg0: i32) -> (i32, i32) {
    %c0_i32 = arith.constant 0 : i32
    %c0_i32_0 = arith.constant 0 : i32
    return %arg0, %c0_i32 : i32, i32
  }
  func.func @transform_1(%arg0: i32) -> (i32, i32) {
    %c0_i32 = arith.constant 0 : i32
    %c0_i32_0 = arith.constant 0 : i32
    %c0_i32_1 = arith.constant 0 : i32
    return %c0_i32, %c0_i32_0 : i32, i32
  }
  func.func @transform_2(%arg0: i32) -> (i32, i32) {
    %c0_i32 = arith.constant 0 : i32
    %c0_i32_0 = arith.constant 0 : i32
    %c0_i32_1 = arith.constant 0 : i32
    return %c0_i32, %c0_i32_0 : i32, i32
  }
  func.func @transform_3(%arg0: i32) -> (i32, i32) {
    %c0_i32 = arith.constant 0 : i32
    %c0_i32_0 = arith.constant 0 : i32
    %c0_i32_1 = arith.constant 0 : i32
    return %c0_i32, %c0_i32_0 : i32, i32
  }
  func.func @transform_4(%arg0: i32) -> (i32, i32) {
    %c0_i32 = arith.constant 0 : i32
    %c0_i32_0 = arith.constant 0 : i32
    return %arg0, %c0_i32 : i32, i32
  }
  func.func @transform_5(%arg0: i32) -> (i32, i32) {
    %c0_i32 = arith.constant 0 : i32
    %c0_i32_0 = arith.constant 0 : i32
    return %arg0, %c0_i32 : i32, i32
  }
  func.func @transform_6(%arg0: i32) -> (i32, i32) {
    %c0_i32 = arith.constant 0 : i32
    %c0_i32_0 = arith.constant 0 : i32
    return %arg0, %c0_i32 : i32, i32
  }
}

module attributes {stable_mosaic.version = 11 : i64} {
  func.func @kernel(%arg0: i32, %arg1: memref<16x32xf32, #tpu.memory_space<vmem>>, %arg2: memref<32x128xbf16, #tpu.memory_space<vmem>>, %arg3: memref<1x128xf32, #tpu.memory_space<vmem>>, %arg4: memref<64x64xbf16, #tpu.memory_space<vmem>>, %arg5: memref<16x32xf32, #tpu.memory_space<vmem>>, %arg6: memref<16x32xf32, #tpu.memory_space<vmem>>, %arg7: memref<16x32xf32, #tpu.memory_space<vmem>>) attributes {dimension_semantics = [#tpu.dimension_semantics<parallel>], iteration_bounds = array<i64: 1>, scalar_prefetch = 0 : i64, scratch_operands = 0 : i64, tpu.core_type = #tpu.core_type<tc>, window_params = [{transform_indices = @transform_0, window_bounds = array<i64: 16, 32>}, {pipeline_mode = #tpu.pipeline_mode<synchronous>, transform_indices = @transform_1, window_bounds = array<i64: 32, 128>}, {pipeline_mode = #tpu.pipeline_mode<synchronous>, transform_indices = @transform_2, window_bounds = array<i64: 1, 128>}, {pipeline_mode = #tpu.pipeline_mode<synchronous>, transform_indices = @transform_3, window_bounds = array<i64: 64, 64>}, {transform_indices = @transform_4, window_bounds = array<i64: 16, 32>}, {transform_indices = @transform_5, window_bounds = array<i64: 16, 32>}, {transform_indices = @transform_6, window_bounds = array<i64: 16, 32>}]} {
    %c0 = arith.constant 0 : index
    %c0_0 = arith.constant 0 : index
    %0 = vector.load %arg1[%c0, %c0_0] : memref<16x32xf32, #tpu.memory_space<vmem>>, vector<16x32xf32>
    %c0_1 = arith.constant 0 : index
    %c0_2 = arith.constant 0 : index
    %1 = vector.load %arg7[%c0_1, %c0_2] : memref<16x32xf32, #tpu.memory_space<vmem>>, vector<16x32xf32>
    tpu.vector_store %arg7[%c0_1, %c0_2], %0 {strides = array<i32>} : memref<16x32xf32, #tpu.memory_space<vmem>>, vector<16x32xf32>,
    %cst = arith.constant dense<0.000000e+00> : vector<16xf32>
    %2 = vector.multi_reduction <add>, %0, %cst [1] : vector<16x32xf32> to vector<16xf32>
    %3 = vector.shape_cast %2 : vector<16xf32> to vector<16x1xf32>
    %cst_3 = arith.constant 3.125000e-02 : f32
    %4 = vector.broadcast %cst_3 : f32 to vector<16x1xf32>
    %5 = arith.mulf %3, %4 : vector<16x1xf32>
    %6 = vector.broadcast %5 : vector<16x1xf32> to vector<16x32xf32>
    %7 = arith.subf %0, %6 : vector<16x32xf32>
    %8 = arith.mulf %7, %7 : vector<16x32xf32>
    %cst_4 = arith.constant dense<0.000000e+00> : vector<16xf32>
    %9 = vector.multi_reduction <add>, %8, %cst_4 [1] : vector<16x32xf32> to vector<16xf32>
    %10 = vector.shape_cast %9 : vector<16xf32> to vector<16x1xf32>
    %cst_5 = arith.constant 3.125000e-02 : f32
    %11 = vector.broadcast %cst_5 : f32 to vector<16x1xf32>
    %12 = arith.mulf %10, %11 : vector<16x1xf32>
    %cst_6 = arith.constant 9.99999974E-6 : f32
    %13 = vector.broadcast %cst_6 : f32 to vector<16x1xf32>
    %14 = arith.addf %12, %13 : vector<16x1xf32>
    %15 = math.rsqrt %14 : vector<16x1xf32>
    %16 = vector.broadcast %15 : vector<16x1xf32> to vector<16x32xf32>
    %17 = arith.mulf %7, %16 : vector<16x32xf32>
    %18 = arith.truncf %17 : vector<16x32xf32> to vector<16x32xbf16>
    %c0_7 = arith.constant 0 : index
    %c0_8 = arith.constant 0 : index
    %19 = vector.load %arg2[%c0_7, %c0_8] : memref<32x128xbf16, #tpu.memory_space<vmem>>, vector<32x128xbf16>
    %cst_9 = arith.constant dense<0.000000e+00> : vector<16x128xf32>
    %20 = tpu.matmul %18, %19, %cst_9 {dimension_numbers = #tpu.dot_dimension_numbers<[1], [0], [0], [1], [0, 0, 1, 1], [], []>} : vector<16x32xbf16>, vector<32x128xbf16>, vector<16x128xf32> -> vector<16x128xf32>
    %c0_10 = arith.constant 0 : index
    %c0_11 = arith.constant 0 : index
    %21 = vector.load %arg3[%c0_10, %c0_11] : memref<1x128xf32, #tpu.memory_space<vmem>>, vector<1x128xf32>
    %22 = vector.broadcast %21 : vector<1x128xf32> to vector<16x128xf32>
    %23 = arith.addf %20, %22 : vector<16x128xf32>
    %24 = vector.extract_strided_slice %23 {offsets = [0, 0], sizes = [16, 64], strides = [1, 1]} : vector<16x128xf32> to vector<16x64xf32>
    %25 = vector.extract_strided_slice %23 {offsets = [0, 64], sizes = [16, 64], strides = [1, 1]} : vector<16x128xf32> to vector<16x64xf32>
    %26 = arith.negf %24 : vector<16x64xf32>
    %27 = math.exp %26 : vector<16x64xf32>
    %cst_12 = arith.constant 1.000000e+00 : f32
    %28 = vector.broadcast %cst_12 : f32 to vector<16x64xf32>
    %29 = arith.addf %28, %27 : vector<16x64xf32>
    %30 = arith.divf %28, %29 : vector<16x64xf32>
    %31 = arith.mulf %24, %30 : vector<16x64xf32>
    %32 = arith.mulf %31, %25 : vector<16x64xf32>
    %33 = arith.truncf %32 : vector<16x64xf32> to vector<16x64xbf16>
    %c0_13 = arith.constant 0 : index
    %c0_14 = arith.constant 0 : index
    %34 = vector.load %arg4[%c0_13, %c0_14] : memref<64x64xbf16, #tpu.memory_space<vmem>>, vector<64x64xbf16>
    %cst_15 = arith.constant dense<0.000000e+00> : vector<16x64xf32>
    %35 = tpu.matmul %33, %34, %cst_15 {dimension_numbers = #tpu.dot_dimension_numbers<[1], [0], [0], [1], [0, 0, 1, 1], [], []>} : vector<16x64xbf16>, vector<64x64xbf16>, vector<16x64xf32> -> vector<16x64xf32>
    %36 = vector.extract_strided_slice %35 {offsets = [0, 0], sizes = [16, 32], strides = [1, 1]} : vector<16x64xf32> to vector<16x32xf32>
    %c0_16 = arith.constant 0 : index
    %c0_17 = arith.constant 0 : index
    %37 = vector.load %arg5[%c0_16, %c0_17] : memref<16x32xf32, #tpu.memory_space<vmem>>, vector<16x32xf32>
    tpu.vector_store %arg5[%c0_16, %c0_17], %36 {strides = array<i32>} : memref<16x32xf32, #tpu.memory_space<vmem>>, vector<16x32xf32>,
    %38 = vector.extract_strided_slice %35 {offsets = [0, 32], sizes = [16, 32], strides = [1, 1]} : vector<16x64xf32> to vector<16x32xf32>
    %c0_18 = arith.constant 0 : index
    %c0_19 = arith.constant 0 : index
    %39 = vector.load %arg6[%c0_18, %c0_19] : memref<16x32xf32, #tpu.memory_space<vmem>>, vector<16x32xf32>
    tpu.vector_store %arg6[%c0_18, %c0_19], %38 {strides = array<i32>} : memref<16x32xf32, #tpu.memory_space<vmem>>, vector<16x32xf32>,
    return
  }
  func.func @transform_0(%arg0: i32) -> (i32, i32) {
    %c0_i32 = arith.constant 0 : i32
    %c0_i32_0 = arith.constant 0 : i32
    return %arg0, %c0_i32 : i32, i32
  }
  func.func @transform_1(%arg0: i32) -> (i32, i32) {
    %c0_i32 = arith.constant 0 : i32
    %c0_i32_0 = arith.constant 0 : i32
    %c0_i32_1 = arith.constant 0 : i32
    return %c0_i32, %c0_i32_0 : i32, i32
  }
  func.func @transform_2(%arg0: i32) -> (i32, i32) {
    %c0_i32 = arith.constant 0 : i32
    %c0_i32_0 = arith.constant 0 : i32
    %c0_i32_1 = arith.constant 0 : i32
    return %c0_i32, %c0_i32_0 : i32, i32
  }
  func.func @transform_3(%arg0: i32) -> (i32, i32) {
    %c0_i32 = arith.constant 0 : i32
    %c0_i32_0 = arith.constant 0 : i32
    %c0_i32_1 = arith.constant 0 : i32
    return %c0_i32, %c0_i32_0 : i32, i32
  }
  func.func @transform_4(%arg0: i32) -> (i32, i32) {
    %c0_i32 = arith.constant 0 : i32
    %c0_i32_0 = arith.constant 0 : i32
    return %arg0, %c0_i32 : i32, i32
  }
  func.func @transform_5(%arg0: i32) -> (i32, i32) {
    %c0_i32 = arith.constant 0 : i32
    %c0_i32_0 = arith.constant 0 : i32
    return %arg0, %c0_i32 : i32, i32
  }
  func.func @transform_6(%arg0: i32) -> (i32, i32) {
    %c0_i32 = arith.constant 0 : i32
    %c0_i32_0 = arith.constant 0 : i32
    return %arg0, %c0_i32 : i32, i32
  }
}

</mosaic_0001>

<bundles_post_ra>
// kernel: tpu_custom_call.1
= control target key start
LH: loop header
LB: loop body
LE: loop exit
PB: predicated region body
PF: predicated region fallthrough
CT: control target
= control target key end

     0   :  { %12 = vsyncpa [#allocation3], 0  ;;  %s622_s0 = inlined_call_operand.hbm [shape: f32[16,32], index: 0, kind: input, shape index: {}]   ;;  %s623_s1 = inlined_call_operand.hbm [shape: bf16[32,128], index: 1, kind: input, shape index: {}]   ;;  %s624_s2 = inlined_call_operand.vmem [shape: f32[1,128], index: 2, kind: input, shape index: {}]   ;;  %s625_s3 = inlined_call_operand.hbm [shape: bf16[64,64], index: 3, kind: input, shape index: {}]   ;;  %s626_s4 = inlined_call_operand.hbm [shape: f32[16,32], index: 4, kind: output, shape index: {0}]   ;;  %s627_s5 = inlined_call_operand.hbm [shape: f32[16,32], index: 5, kind: output, shape index: {1}]   ;;  %s628_s6 = inlined_call_operand.hbm [shape: f32[16,32], index: 6, kind: output, shape index: {2}]  }
   0x1   :  { %13 = vsyncpa [#allocation6], 0 }
   0x2   :  { %14 = vsyncpa [#allocation4], 0 }
   0x3   :  { %15 = vsyncpa [#allocation10], 0  ;;  %s524_s21 = smov [#allocation5]  }
   0x4   :  { %s33_s22 = sshll.u32 %s524_s21, 4  ;;  %s34_s22 = int_to_ptr.vmem [resolvable:$true] %s33_s22 }
   0x5   :  { %s404_s23 = scalar_lea.vmem %s34_s22, 256  ;;  %p409_p1 = scmp.lt.s32.totalorder %s34_s22, %s34_s22 }
   0x6   :  { %p405_p0 = scmp.ne.s32.totalorder %s34_s22, %s404_s23  ;;  %p410_p2 = scmp.lt.s32.totalorder %s404_s23, %s404_s23 }
   0x8   :  { %p411_p3 = por %p410_p2, %p409_p1 }
   0xa   :  { %p412_p4 = pnand %p411_p3, %p405_p0 }
   0xc   :  { %415 = shalt.err (!%p412_p4)
}
   0xd   :  { %s525_s24 = smov 64   ;;  %s526_s25 = smov 4  }
   0xe   :  { %39 = dma.hbm_to_vmem [thread:$0]  %s623_s1, 256, %s34_s22, [#allocation6], %s525_s24, %s525_s24, %s526_s25  }
   0xf   :  { %s527_s28 = smov [#allocation2]  }
  0x10   :  { %s21_s29 = sshll.u32 %s527_s28, 4  ;;  %s22_s29 = int_to_ptr.vmem [resolvable:$true] %s21_s29 }
  0x11   :  { %s424_s30 = scalar_lea.vmem %s22_s29, 256  ;;  %p429_p6 = scmp.lt.s32.totalorder %s22_s29, %s22_s29 }
  0x12   :  { %p425_p5 = scmp.ne.s32.totalorder %s22_s29, %s424_s30  ;;  %p430_p7 = scmp.lt.s32.totalorder %s424_s30, %s424_s30 }
  0x14   :  { %p431_p8 = por %p430_p7, %p429_p6 }
  0x16   :  { %p432_p9 = pnand %p431_p8, %p425_p5 }
  0x18   :  { %435 = shalt.err (!%p432_p9)
}
  0x19   :  { %s528_s7 = smov 128   ;;  %s529_s8 = smov 8  }
  0x1a   :  { %27 = dma.hbm_to_vmem [thread:$0]  %s622_s0, 256, %s22_s29, [#allocation3], %s528_s7, %s528_s7, %s529_s8  }
  0x1b   :  { %s530_s1 = smov [#allocation7]  }
  0x1c   :  { %s47_s11 = sshll.u32 %s530_s1, 4  ;;  %s48_s11 = int_to_ptr.vmem [resolvable:$true] %s47_s11 }
  0x1d   :  { %s444_s12 = scalar_lea.vmem %s48_s11, 512  ;;  %p449_p11 = scmp.lt.s32.totalorder %s48_s11, %s48_s11 }
  0x1e   :  { %p445_p10 = scmp.ne.s32.totalorder %s48_s11, %s444_s12  ;;  %p450_p12 = scmp.lt.s32.totalorder %s444_s12, %s444_s12 }
  0x20   :  { %p451_p13 = por %p450_p12, %p449_p11 }
  0x22   :  { %p452_p0 = pnand %p451_p13, %p445_p10 }
  0x24   :  { %455 = shalt.err (!%p452_p0)
}
  0x25   :  { %53 = dma.hbm_to_vmem [thread:$0]  %s625_s3, 512, %s48_s11, [#allocation6], %s525_s24, %s525_s24, %s526_s25  }
  0x26   :  { %516 = dma.done.wait [#allocation3], 256  }
  0x27   :  { %517 = vsyncadd [#allocation3], 4294967040 }
  0x28   :  { %518 = dma.done.wait [#allocation6], 768  }
  0x29   :  { %519 = vsyncadd [#allocation6], 4294966528  ;;  %vm66_vm0 = vcmask 261120   ;;  %v64_v0 = vld [vmem:[#allocation2] sm:$0xff]  ;;  %v65_v1 = vld [vmem:[#allocation2 + $0x8] sm:$0xff]  ;;  %v531_v15 = vmov 0.0  }
  0x2a   :  { %v69_v2 = vsel %vm66_vm0, %v64_v0, 0.0  ;;  %67 = vst.msk [vmem:[#allocation11] sm:$0xff] %vm66_vm0, %v64_v0  ;;  %68 = vst.msk [vmem:[#allocation11 + $0x8] sm:$0xff] %vm66_vm0, %v65_v1  ;;  %v72_v3 = vsel %vm66_vm0, %v65_v1, 0.0  ;;  %v378_v14 = vld [vmem:[#allocation5 + $0x8] sm:$0xff]   ;;  %345 = vmatprep.subr.bf16.mxu0 %v531_v15  ;;  %vm532_vm1 = vmmov 0   ;;  %353 = vmatprep.subr.bf16.mxu1 %v531_v15 }
  0x2b   :  { %70 = vadd.xlane.f32.xlu0 %v69_v2  ;;  %349 = vmatprep.mubr.msk.bf16.mxu0 %vm532_vm1, %v531_v15  ;;  %v379_v16 = vld [vmem:[#allocation5] sm:$0xff]   ;;  %v380_v28 = vld [vmem:[#allocation7 + $0x18] sm:$0xff]   ;;  %v382_v30 = vld [vmem:[#allocation7 + $0x8] sm:$0xff]   ;;  %vm220_vm2 = vcmask 523264   ;;  %s534_s16 = smov 96  }
  0x2c   :  { %346 = vmatpush3.bf16.msra.mxu0 %v378_v14  ;;  %361 = vmatprep.mubr.msk.bf16.mxu1 %vm532_vm1, %v531_v15  ;;  %v381_v29 = vld [vmem:[#allocation7 + $0x10] sm:$0xff]   ;;  %v383_v31 = vld [vmem:[#allocation7] sm:$0xff]  }
  0x2d   :  { %347 = vmatprep.subr.bf16.mxu0 %v531_v15  ;;  %354 = vmatpush3.bf16.msra.mxu1 %v380_v28  ;;  %v326_v32 = vld [vmem:[%s624_s2] ss:$0 sm:$0xff]  ;;  %s533_s2 = smov [#allocation8]  }
  0x2e   :  { %355 = vmatprep.subr.bf16.mxu1 %v531_v15  ;;  %s282_s15 = sshll.u32 %s533_s2, 4  ;;  %s283_s15 = int_to_ptr.vmem [resolvable:$true] %s282_s15 }
  0x2f   :  { %73 = vadd.xlane.f32.xlu0 %v72_v3  ;;  %s456_s17 = scalar_lea.vmem %s283_s15, 256  ;;  %p461_p2 = scmp.lt.s32.totalorder %s283_s15, %s283_s15 }
  0x30   :  { %348 = vmatpush3.bf16.msra.mxu0 %v379_v16  ;;  %p457_p1 = scmp.ne.s32.totalorder %s283_s15, %s456_s17  ;;  %p462_p3 = scmp.lt.s32.totalorder %s456_s17, %s456_s17 }
  0x31   :  { %356 = vmatpush3.bf16.msra.mxu1 %v381_v29 }
  0x32   :  { %357 = vmatprep.subr.bf16.mxu1 %v531_v15  ;;  %p463_p4 = por %p462_p3, %p461_p2 }
  0x34   :  { %p464_p5 = pnand %p463_p4, %p457_p1 }
  0x35   :  { %358 = vmatpush3.bf16.msra.mxu1 %v382_v30 }
  0x36   :  { %359 = vmatprep.subr.bf16.mxu1 %v531_v15 }
  0x39   :  { %360 = vmatpush3.bf16.msra.mxu1 %v383_v31 }
  0xb4   :  { %v71_v4 = vpop.xlane.xlu0 %70 }
  0xb5   :  { %v75_v5 = vmul.f32 0.03125, %v71_v4 }
  0xb7   :  { %v77_v6 = vsub.f32 %v64_v0, %v75_v5 }
  0xb8   :  { %v74_v7 = vpop.xlane.xlu0 %73 }
  0xb9   :  { %v76_v8 = vmul.f32 0.03125, %v74_v7  ;;  %v79_v9 = vmul.f32 %v77_v6, %v77_v6 }
  0xbb   :  { %v78_v10 = vsub.f32 %v65_v1, %v76_v8  ;;  %v81_v11 = vsel %vm66_vm0, %v79_v9, 0.0 }
  0xbc   :  { %82 = vadd.xlane.f32.xlu1 %v81_v11 }
  0xbd   :  { %v80_v12 = vmul.f32 %v78_v10, %v78_v10 }
  0xbf   :  { %v84_v13 = vsel %vm66_vm0, %v80_v12, 0.0 }
  0xc0   :  { %85 = vadd.xlane.f32.xlu1 %v84_v13 }
 0x145   :  { %v83_v17 = vpop.xlane.xlu1 %82 }
 0x146   :  { %v87_v18 = vmul.f32 0.03125, %v83_v17 }
 0x148   :  { %v89_v19 = vadd.f32 1e-05, %v87_v18 }
 0x149   :  { %v86_v20 = vpop.xlane.xlu1 %85 }
 0x14a   :  { %v88_v21 = vmul.f32 0.03125, %v86_v20  ;;  %384 = vrsqrt.f32 %v89_v19 }
 0x14c   :  { %v90_v22 = vadd.f32 1e-05, %v88_v21 }
 0x14e   :  { %386 = vrsqrt.f32 %v90_v22 }
 0x157   :  { %v385_v23 = vpop.eup %384 }
 0x158   :  { %v93_v25 = vmul.f32 %v385_v23, %v77_v6 }
 0x15b   :  { %v387_v24 = vpop.eup %386 }
 0x15c   :  { %v94_v26 = vmul.f32 %v387_v24, %v78_v10 }
 0x15e   :  { %v95_v27 = vpack.c.bf16 %v94_v26, %v93_v25 }
 0x160   :  { %350 = vmatmul.mubr.msk.bf16.vlgmr.msra.gmra.mxu0 %vm66_vm0, %v95_v27 }
 0x220   :  { %v156_v33 = vpop.f32.mrf.mxu0 }
 0x221   :  { %v157_v34 = vadd.f32 %v326_v32, %v156_v33 }
 0x222   :  { %v351_v35 = vpop.f32.mrf.mxu0 }
 0x223   :  { %179 = vrot.lane.b32.xlu0 %v157_v34, %s525_s24  ;;  %v330_v39 = vmul.f32 -1.442695, %v157_v34 }
 0x224   :  { %v159_v36 = vpop.f32.mrf.mxu0 }
 0x225   :  { %v160_v37 = vadd.f32 %v326_v32, %v159_v36  ;;  %388 = vpow2.f32 %v330_v39 }
 0x226   :  { %v352_v38 = vpop.f32.mrf.mxu0 }
 0x227   :  { %181 = vrot.lane.b32.xlu1 %v160_v37, %s525_s24  ;;  %v331_v40 = vmul.f32 -1.442695, %v160_v37 }
 0x229   :  { %390 = vpow2.f32 %v331_v40 }
 0x232   :  { %v389_v41 = vpop.eup %388 }
 0x233   :  { %v169_v43 = vadd.f32 1.0, %v389_v41 }
 0x235   :  { %392 = vrcp.f32 %v169_v43 }
 0x236   :  { %v391_v42 = vpop.eup %390 }
 0x237   :  { %v170_v44 = vadd.f32 1.0, %v391_v42 }
 0x239   :  { %394 = vrcp.f32 %v170_v44 }
 0x242   :  { %v393_v45 = vpop.eup %392 }
 0x243   :  { %v175_v48 = vmul.f32 %v393_v45, %v157_v34 }
 0x246   :  { %v395_v46 = vpop.eup %394 }
 0x247   :  { %v176_v49 = vmul.f32 %v395_v46, %v160_v37 }
 0x295   :  { %v180_v47 = vpop.permute.xlu0 %179 }
 0x296   :  { %v185_v51 = vmul.f32 %v180_v47, %v175_v48 }
 0x299   :  { %v182_v50 = vpop.permute.xlu1 %181 }
 0x29a   :  { %v186_v52 = vmul.f32 %v182_v50, %v176_v49 }
 0x29c   :  { %v187_v53 = vpack.c.bf16 %v186_v52, %v185_v51 }
 0x29e   :  { %362 = vmatmul.mubr.msk.bf16.vlgmr.msra.gmra.mxu1 %vm220_vm2, %v187_v53 }
 0x35e   :  { %v258_v54 = vpop.f32.mrf.mxu1 }
 0x35f   :  { %265 = vst.msk [vmem:[#allocation8] sm:$0xff] %vm66_vm0, %v258_v54  ;;  %269 = vrot.lane.b32.xlu1 %v258_v54, %s534_s16 }
 0x360   :  { %v363_v55 = vpop.f32.mrf.mxu1 }
 0x362   :  { %v261_v56 = vpop.f32.mrf.mxu1 }
 0x363   :  { %266 = vst.msk [vmem:[#allocation8 + $0x8] sm:$0xff] %vm66_vm0, %v261_v56  ;;  %271 = vrot.lane.b32.xlu1 %v261_v56, %s534_s16 }
 0x364   :  { %v364_v57 = vpop.f32.mrf.mxu1 }
 0x365   :  { %467 = shalt.err (!%p464_p5)
}
 0x366   :  { %288 = dma.vmem_to_hbm [thread:$0]  %s283_s15, 256, %s626_s4, [#allocation4], %s528_s7, %s528_s7, %s529_s8  }
 0x367   :  { %s535_s20 = smov [#allocation9]   ;;  %s536_s22 = smov [#allocation11]  }
 0x368   :  { %s294_s21 = sshll.u32 %s535_s20, 4  ;;  %s306_s23 = sshll.u32 %s536_s22, 4  ;;  %s295_s21 = int_to_ptr.vmem [resolvable:$true] %s294_s21  ;;  %s307_s23 = int_to_ptr.vmem [resolvable:$true] %s306_s23 }
 0x369   :  { %s476_s24 = scalar_lea.vmem %s295_s21, 256  ;;  %p481_p7 = scmp.lt.s32.totalorder %s295_s21, %s295_s21 }
 0x36a   :  { %p477_p6 = scmp.ne.s32.totalorder %s295_s21, %s476_s24  ;;  %p482_p8 = scmp.lt.s32.totalorder %s476_s24, %s476_s24 }
 0x36c   :  { %p483_p9 = por %p482_p8, %p481_p7 }
 0x36e   :  { %p484_p10 = pnand %p483_p9, %p477_p6 }
 0x3d1   :  { %v270_v58 = vpop.permute.xlu1 %269 }
 0x3d2   :  { %275 = vst.msk [vmem:[#allocation9] sm:$0xff] %vm66_vm0, %v270_v58 }
 0x3d5   :  { %v272_v59 = vpop.permute.xlu1 %271 }
 0x3d6   :  { %276 = vst.msk [vmem:[#allocation9 + $0x8] sm:$0xff] %vm66_vm0, %v272_v59 }
 0x3d7   :  { %487 = shalt.err (!%p484_p10)
}
 0x3d8   :  { %300 = dma.vmem_to_hbm [thread:$0]  %s295_s21, 256, %s627_s5, [#allocation10], %s528_s7, %s528_s7, %s529_s8  }
 0x3d9   :  { %s496_s26 = scalar_lea.vmem %s307_s23, 256  ;;  %p501_p12 = scmp.lt.s32.totalorder %s307_s23, %s307_s23 }
 0x3da   :  { %p497_p11 = scmp.ne.s32.totalorder %s307_s23, %s496_s26  ;;  %p502_p13 = scmp.lt.s32.totalorder %s496_s26, %s496_s26 }
 0x3dc   :  { %p503_p0 = por %p502_p13, %p501_p12 }
 0x3de   :  { %p504_p1 = pnand %p503_p0, %p497_p11 }
 0x3e0   :  { %507 = shalt.err (!%p504_p1)
}
 0x3e1   :  { %312 = dma.vmem_to_hbm [thread:$0]  %s307_s23, 256, %s628_s6, [#allocation10], %s528_s7, %s528_s7, %s529_s8  }
 0x3e2   :  { %520 = dma.done.wait [#allocation4], 256  }
 0x3e3   :  { %521 = vsyncadd [#allocation4], 4294967040 }
 0x3e4   :  { %522 = dma.done.wait [#allocation10], 512  }
 0x3e5   :  { %523 = vsyncadd [#allocation10], 4294966784 }
 0x3e6   :  { %322 = vsyncpa [#allocation3], 1 }
 0x3e7   :  { %323 = vsyncpa [#allocation6], 1 }
 0x3e8   :  { %324 = vsyncpa [#allocation4], 1 }
 0x3e9   :  { %325 = vsyncpa [#allocation10], 1 }

// kernel: tpu_custom_call.1
= control target key start
LH: loop header
LB: loop body
LE: loop exit
PB: predicated region body
PF: predicated region fallthrough
CT: control target
= control target key end

     0   :  { %12 = vsyncpa [#allocation3], 0  ;;  %s622_s0 = inlined_call_operand.hbm [shape: f32[16,32], index: 0, kind: input, shape index: {}]   ;;  %s623_s1 = inlined_call_operand.hbm [shape: bf16[32,128], index: 1, kind: input, shape index: {}]   ;;  %s624_s2 = inlined_call_operand.vmem [shape: f32[1,128], index: 2, kind: input, shape index: {}]   ;;  %s625_s3 = inlined_call_operand.hbm [shape: bf16[64,64], index: 3, kind: input, shape index: {}]   ;;  %s626_s4 = inlined_call_operand.hbm [shape: f32[16,32], index: 4, kind: output, shape index: {0}]   ;;  %s627_s5 = inlined_call_operand.hbm [shape: f32[16,32], index: 5, kind: output, shape index: {1}]   ;;  %s628_s6 = inlined_call_operand.hbm [shape: f32[16,32], index: 6, kind: output, shape index: {2}]  }
   0x1   :  { %13 = vsyncpa [#allocation6], 0 }
   0x2   :  { %14 = vsyncpa [#allocation4], 0 }
   0x3   :  { %15 = vsyncpa [#allocation10], 0  ;;  %s524_s21 = smov [#allocation5]  }
   0x4   :  { %s33_s22 = sshll.u32 %s524_s21, 4  ;;  %s34_s22 = int_to_ptr.vmem [resolvable:$true] %s33_s22 }
   0x5   :  { %s404_s23 = scalar_lea.vmem %s34_s22, 256  ;;  %p409_p1 = scmp.lt.s32.totalorder %s34_s22, %s34_s22 }
   0x6   :  { %p405_p0 = scmp.ne.s32.totalorder %s34_s22, %s404_s23  ;;  %p410_p2 = scmp.lt.s32.totalorder %s404_s23, %s404_s23 }
   0x8   :  { %p411_p3 = por %p410_p2, %p409_p1 }
   0xa   :  { %p412_p4 = pnand %p411_p3, %p405_p0 }
   0xc   :  { %415 = shalt.err (!%p412_p4)
}
   0xd   :  { %s525_s24 = smov 64   ;;  %s526_s25 = smov 4  }
   0xe   :  { %39 = dma.hbm_to_vmem [thread:$0]  %s623_s1, 256, %s34_s22, [#allocation6], %s525_s24, %s525_s24, %s526_s25  }
   0xf   :  { %s527_s28 = smov [#allocation2]  }
  0x10   :  { %s21_s29 = sshll.u32 %s527_s28, 4  ;;  %s22_s29 = int_to_ptr.vmem [resolvable:$true] %s21_s29 }
  0x11   :  { %s424_s30 = scalar_lea.vmem %s22_s29, 256  ;;  %p429_p6 = scmp.lt.s32.totalorder %s22_s29, %s22_s29 }
  0x12   :  { %p425_p5 = scmp.ne.s32.totalorder %s22_s29, %s424_s30  ;;  %p430_p7 = scmp.lt.s32.totalorder %s424_s30, %s424_s30 }
  0x14   :  { %p431_p8 = por %p430_p7, %p429_p6 }
  0x16   :  { %p432_p9 = pnand %p431_p8, %p425_p5 }
  0x18   :  { %435 = shalt.err (!%p432_p9)
}
  0x19   :  { %s528_s7 = smov 128   ;;  %s529_s8 = smov 8  }
  0x1a   :  { %27 = dma.hbm_to_vmem [thread:$0]  %s622_s0, 256, %s22_s29, [#allocation3], %s528_s7, %s528_s7, %s529_s8  }
  0x1b   :  { %s530_s1 = smov [#allocation7]  }
  0x1c   :  { %s47_s11 = sshll.u32 %s530_s1, 4  ;;  %s48_s11 = int_to_ptr.vmem [resolvable:$true] %s47_s11 }
  0x1d   :  { %s444_s12 = scalar_lea.vmem %s48_s11, 512  ;;  %p449_p11 = scmp.lt.s32.totalorder %s48_s11, %s48_s11 }
  0x1e   :  { %p445_p10 = scmp.ne.s32.totalorder %s48_s11, %s444_s12  ;;  %p450_p12 = scmp.lt.s32.totalorder %s444_s12, %s444_s12 }
  0x20   :  { %p451_p13 = por %p450_p12, %p449_p11 }
  0x22   :  { %p452_p0 = pnand %p451_p13, %p445_p10 }
  0x24   :  { %455 = shalt.err (!%p452_p0)
}
  0x25   :  { %53 = dma.hbm_to_vmem [thread:$0]  %s625_s3, 512, %s48_s11, [#allocation6], %s525_s24, %s525_s24, %s526_s25  }
  0x26   :  { %516 = dma.done.wait [#allocation3], 256  }
  0x27   :  { %517 = vsyncadd [#allocation3], 4294967040 }
  0x28   :  { %518 = dma.done.wait [#allocation6], 768  }
  0x29   :  { %519 = vsyncadd [#allocation6], 4294966528  ;;  %vm66_vm0 = vcmask 261120   ;;  %v64_v0 = vld [vmem:[#allocation2] sm:$0xff]  ;;  %v65_v1 = vld [vmem:[#allocation2 + $0x8] sm:$0xff]  ;;  %v531_v15 = vmov 0.0  }
  0x2a   :  { %v69_v2 = vsel %vm66_vm0, %v64_v0, 0.0  ;;  %67 = vst.msk [vmem:[#allocation11] sm:$0xff] %vm66_vm0, %v64_v0  ;;  %68 = vst.msk [vmem:[#allocation11 + $0x8] sm:$0xff] %vm66_vm0, %v65_v1  ;;  %v72_v3 = vsel %vm66_vm0, %v65_v1, 0.0  ;;  %v378_v14 = vld [vmem:[#allocation5 + $0x8] sm:$0xff]   ;;  %345 = vmatprep.subr.bf16.mxu0 %v531_v15  ;;  %vm532_vm1 = vmmov 0   ;;  %353 = vmatprep.subr.bf16.mxu1 %v531_v15 }
  0x2b   :  { %70 = vadd.xlane.f32.xlu0 %v69_v2  ;;  %349 = vmatprep.mubr.msk.bf16.mxu0 %vm532_vm1, %v531_v15  ;;  %v379_v16 = vld [vmem:[#allocation5] sm:$0xff]   ;;  %v380_v28 = vld [vmem:[#allocation7 + $0x18] sm:$0xff]   ;;  %v382_v30 = vld [vmem:[#allocation7 + $0x8] sm:$0xff]   ;;  %vm220_vm2 = vcmask 523264   ;;  %s534_s16 = smov 96  }
  0x2c   :  { %346 = vmatpush3.bf16.msra.mxu0 %v378_v14  ;;  %361 = vmatprep.mubr.msk.bf16.mxu1 %vm532_vm1, %v531_v15  ;;  %v381_v29 = vld [vmem:[#allocation7 + $0x10] sm:$0xff]   ;;  %v383_v31 = vld [vmem:[#allocation7] sm:$0xff]  }
  0x2d   :  { %347 = vmatprep.subr.bf16.mxu0 %v531_v15  ;;  %354 = vmatpush3.bf16.msra.mxu1 %v380_v28  ;;  %v326_v32 = vld [vmem:[%s624_s2] ss:$0 sm:$0xff]  ;;  %s533_s2 = smov [#allocation8]  }
  0x2e   :  { %355 = vmatprep.subr.bf16.mxu1 %v531_v15  ;;  %s282_s15 = sshll.u32 %s533_s2, 4  ;;  %s283_s15 = int_to_ptr.vmem [resolvable:$true] %s282_s15 }
  0x2f   :  { %73 = vadd.xlane.f32.xlu0 %v72_v3  ;;  %s456_s17 = scalar_lea.vmem %s283_s15, 256  ;;  %p461_p2 = scmp.lt.s32.totalorder %s283_s15, %s283_s15 }
  0x30   :  { %348 = vmatpush3.bf16.msra.mxu0 %v379_v16  ;;  %p457_p1 = scmp.ne.s32.totalorder %s283_s15, %s456_s17  ;;  %p462_p3 = scmp.lt.s32.totalorder %s456_s17, %s456_s17 }
  0x31   :  { %356 = vmatpush3.bf16.msra.mxu1 %v381_v29 }
  0x32   :  { %357 = vmatprep.subr.bf16.mxu1 %v531_v15  ;;  %p463_p4 = por %p462_p3, %p461_p2 }
  0x34   :  { %p464_p5 = pnand %p463_p4, %p457_p1 }
  0x35   :  { %358 = vmatpush3.bf16.msra.mxu1 %v382_v30 }
  0x36   :  { %359 = vmatprep.subr.bf16.mxu1 %v531_v15 }
  0x39   :  { %360 = vmatpush3.bf16.msra.mxu1 %v383_v31 }
  0xb4   :  { %v71_v4 = vpop.xlane.xlu0 %70 }
  0xb5   :  { %v75_v5 = vmul.f32 0.03125, %v71_v4 }
  0xb7   :  { %v77_v6 = vsub.f32 %v64_v0, %v75_v5 }
  0xb8   :  { %v74_v7 = vpop.xlane.xlu0 %73 }
  0xb9   :  { %v76_v8 = vmul.f32 0.03125, %v74_v7  ;;  %v79_v9 = vmul.f32 %v77_v6, %v77_v6 }
  0xbb   :  { %v78_v10 = vsub.f32 %v65_v1, %v76_v8  ;;  %v81_v11 = vsel %vm66_vm0, %v79_v9, 0.0 }
  0xbc   :  { %82 = vadd.xlane.f32.xlu1 %v81_v11 }
  0xbd   :  { %v80_v12 = vmul.f32 %v78_v10, %v78_v10 }
  0xbf   :  { %v84_v13 = vsel %vm66_vm0, %v80_v12, 0.0 }
  0xc0   :  { %85 = vadd.xlane.f32.xlu1 %v84_v13 }
 0x145   :  { %v83_v17 = vpop.xlane.xlu1 %82 }
 0x146   :  { %v87_v18 = vmul.f32 0.03125, %v83_v17 }
 0x148   :  { %v89_v19 = vadd.f32 1e-05, %v87_v18 }
 0x149   :  { %v86_v20 = vpop.xlane.xlu1 %85 }
 0x14a   :  { %v88_v21 = vmul.f32 0.03125, %v86_v20  ;;  %384 = vrsqrt.f32 %v89_v19 }
 0x14c   :  { %v90_v22 = vadd.f32 1e-05, %v88_v21 }
 0x14e   :  { %386 = vrsqrt.f32 %v90_v22 }
 0x157   :  { %v385_v23 = vpop.eup %384 }
 0x158   :  { %v93_v25 = vmul.f32 %v385_v23, %v77_v6 }
 0x15b   :  { %v387_v24 = vpop.eup %386 }
 0x15c   :  { %v94_v26 = vmul.f32 %v387_v24, %v78_v10 }
 0x15e   :  { %v95_v27 = vpack.c.bf16 %v94_v26, %v93_v25 }
 0x160   :  { %350 = vmatmul.mubr.msk.bf16.vlgmr.msra.gmra.mxu0 %vm66_vm0, %v95_v27 }
 0x220   :  { %v156_v33 = vpop.f32.mrf.mxu0 }
 0x221   :  { %v157_v34 = vadd.f32 %v326_v32, %v156_v33 }
 0x222   :  { %v351_v35 = vpop.f32.mrf.mxu0 }
 0x223   :  { %179 = vrot.lane.b32.xlu0 %v157_v34, %s525_s24  ;;  %v330_v39 = vmul.f32 -1.442695, %v157_v34 }
 0x224   :  { %v159_v36 = vpop.f32.mrf.mxu0 }
 0x225   :  { %v160_v37 = vadd.f32 %v326_v32, %v159_v36  ;;  %388 = vpow2.f32 %v330_v39 }
 0x226   :  { %v352_v38 = vpop.f32.mrf.mxu0 }
 0x227   :  { %181 = vrot.lane.b32.xlu1 %v160_v37, %s525_s24  ;;  %v331_v40 = vmul.f32 -1.442695, %v160_v37 }
 0x229   :  { %390 = vpow2.f32 %v331_v40 }
 0x232   :  { %v389_v41 = vpop.eup %388 }
 0x233   :  { %v169_v43 = vadd.f32 1.0, %v389_v41 }
 0x235   :  { %392 = vrcp.f32 %v169_v43 }
 0x236   :  { %v391_v42 = vpop.eup %390 }
 0x237   :  { %v170_v44 = vadd.f32 1.0, %v391_v42 }
 0x239   :  { %394 = vrcp.f32 %v170_v44 }
 0x242   :  { %v393_v45 = vpop.eup %392 }
 0x243   :  { %v175_v48 = vmul.f32 %v393_v45, %v157_v34 }
 0x246   :  { %v395_v46 = vpop.eup %394 }
 0x247   :  { %v176_v49 = vmul.f32 %v395_v46, %v160_v37 }
 0x295   :  { %v180_v47 = vpop.permute.xlu0 %179 }
 0x296   :  { %v185_v51 = vmul.f32 %v180_v47, %v175_v48 }
 0x299   :  { %v182_v50 = vpop.permute.xlu1 %181 }
 0x29a   :  { %v186_v52 = vmul.f32 %v182_v50, %v176_v49 }
 0x29c   :  { %v187_v53 = vpack.c.bf16 %v186_v52, %v185_v51 }
 0x29e   :  { %362 = vmatmul.mubr.msk.bf16.vlgmr.msra.gmra.mxu1 %vm220_vm2, %v187_v53 }
 0x35e   :  { %v258_v54 = vpop.f32.mrf.mxu1 }
 0x35f   :  { %265 = vst.msk [vmem:[#allocation8] sm:$0xff] %vm66_vm0, %v258_v54  ;;  %269 = vrot.lane.b32.xlu1 %v258_v54, %s534_s16 }
 0x360   :  { %v363_v55 = vpop.f32.mrf.mxu1 }
 0x362   :  { %v261_v56 = vpop.f32.mrf.mxu1 }
 0x363   :  { %266 = vst.msk [vmem:[#allocation8 + $0x8] sm:$0xff] %vm66_vm0, %v261_v56  ;;  %271 = vrot.lane.b32.xlu1 %v261_v56, %s534_s16 }
 0x364   :  { %v364_v57 = vpop.f32.mrf.mxu1 }
 0x365   :  { %467 = shalt.err (!%p464_p5)
}
 0x366   :  { %288 = dma.vmem_to_hbm [thread:$0]  %s283_s15, 256, %s626_s4, [#allocation4], %s528_s7, %s528_s7, %s529_s8  }
 0x367   :  { %s535_s20 = smov [#allocation9]   ;;  %s536_s22 = smov [#allocation11]  }
 0x368   :  { %s294_s21 = sshll.u32 %s535_s20, 4  ;;  %s306_s23 = sshll.u32 %s536_s22, 4  ;;  %s295_s21 = int_to_ptr.vmem [resolvable:$true] %s294_s21  ;;  %s307_s23 = int_to_ptr.vmem [resolvable:$true] %s306_s23 }
 0x369   :  { %s476_s24 = scalar_lea.vmem %s295_s21, 256  ;;  %p481_p7 = scmp.lt.s32.totalorder %s295_s21, %s295_s21 }
 0x36a   :  { %p477_p6 = scmp.ne.s32.totalorder %s295_s21, %s476_s24  ;;  %p482_p8 = scmp.lt.s32.totalorder %s476_s24, %s476_s24 }
 0x36c   :  { %p483_p9 = por %p482_p8, %p481_p7 }
 0x36e   :  { %p484_p10 = pnand %p483_p9, %p477_p6 }
 0x3d1   :  { %v270_v58 = vpop.permute.xlu1 %269 }
 0x3d2   :  { %275 = vst.msk [vmem:[#allocation9] sm:$0xff] %vm66_vm0, %v270_v58 }
 0x3d5   :  { %v272_v59 = vpop.permute.xlu1 %271 }
 0x3d6   :  { %276 = vst.msk [vmem:[#allocation9 + $0x8] sm:$0xff] %vm66_vm0, %v272_v59 }
 0x3d7   :  { %487 = shalt.err (!%p484_p10)
}
 0x3d8   :  { %300 = dma.vmem_to_hbm [thread:$0]  %s295_s21, 256, %s627_s5, [#allocation10], %s528_s7, %s528_s7, %s529_s8  }
 0x3d9   :  { %s496_s26 = scalar_lea.vmem %s307_s23, 256  ;;  %p501_p12 = scmp.lt.s32.totalorder %s307_s23, %s307_s23 }
 0x3da   :  { %p497_p11 = scmp.ne.s32.totalorder %s307_s23, %s496_s26  ;;  %p502_p13 = scmp.lt.s32.totalorder %s496_s26, %s496_s26 }
 0x3dc   :  { %p503_p0 = por %p502_p13, %p501_p12 }
 0x3de   :  { %p504_p1 = pnand %p503_p0, %p497_p11 }
 0x3e0   :  { %507 = shalt.err (!%p504_p1)
}
 0x3e1   :  { %312 = dma.vmem_to_hbm [thread:$0]  %s307_s23, 256, %s628_s6, [#allocation10], %s528_s7, %s528_s7, %s529_s8  }
 0x3e2   :  { %520 = dma.done.wait [#allocation4], 256  }
 0x3e3   :  { %521 = vsyncadd [#allocation4], 4294967040 }
 0x3e4   :  { %522 = dma.done.wait [#allocation10], 512  }
 0x3e5   :  { %523 = vsyncadd [#allocation10], 4294966784 }
 0x3e6   :  { %322 = vsyncpa [#allocation3], 1 }
 0x3e7   :  { %323 = vsyncpa [#allocation6], 1 }
 0x3e8   :  { %324 = vsyncpa [#allocation4], 1 }
 0x3e9   :  { %325 = vsyncpa [#allocation10], 1 }

</bundles_post_ra>
